<compile_context>
chip_gen: v7x
topology: tpu7x:2x2x1
jax: 0.10.0
libtpu: 0.0.40
codegen_flags: <defaults>
</compile_context>

<pallas_src>
import functools

import jax
import jax.numpy as jnp
from jax.experimental import pallas as pl
from jax.experimental.pallas import tpu as pltpu

LN_EPS = 1e-5


def _patch_merging_kernel(x_ref, wa_ref, wb_ref, cs_ref, bias_ref, o_ref, *,
                          cast_before_reshape):
    # x_ref : (t_r, 2, W2, 2D)  t_r "super rows" (pairs of source rows);
    #         parity axis = even/odd source row; channels = [even-col | odd-col].
    # wa_ref: (2D, 2D) gamma-folded weights for even-source-row channels [x0|x2]
    # wb_ref: (2D, 2D) gamma-folded weights for odd-source-row channels  [x1|x3]
    # cs_ref: (1, 2D)  column sums of the full gamma-folded weight (f32)
    # bias  : (1, 2D)  beta @ W (f32)
    # o_ref : (t_r, W2, 2D)
    t_r, _, w2, c2 = x_ref.shape
    m = t_r * w2
    mm_dtype = wa_ref.dtype

    a3 = x_ref[:, 0, :, :]          # even source row -> [x0 | x2]
    b3 = x_ref[:, 1, :, :]          # odd source row  -> [x1 | x3]
    if cast_before_reshape:
        # 16-bit inputs whose W2 is not 16-aligned: merge sublanes in f32
        # (always 8-aligned after wrapper padding) so the reshape is a relabel.
        a3 = a3.astype(jnp.float32)
        b3 = b3.astype(jnp.float32)
    xa = a3.reshape(m, c2)
    xb = b3.reshape(m, c2)

    # LayerNorm statistics over all 4D channels via E[x], E[x^2] in f32.
    # (E[x^2]-E[x]^2 is cancellation-prone only if |mean| >> std; fine for
    # LN-scale activations.)
    a32 = xa.astype(jnp.float32)
    b32 = xb.astype(jnp.float32)
    inv_n = 1.0 / float(2 * c2)
    s1 = jnp.sum(a32, axis=-1, keepdims=True) + jnp.sum(b32, axis=-1, keepdims=True)
    s2 = (jnp.sum(a32 * a32, axis=-1, keepdims=True)
          + jnp.sum(b32 * b32, axis=-1, keepdims=True))
    mean = s1 * inv_n
    var = s2 * inv_n - mean * mean
    rstd = jax.lax.rsqrt(var + LN_EPS)

    # Matmul on the raw activations (bf16 MXU operands by default, f32 acc);
    # the LayerNorm scale/shift is applied in the epilogue.
    acc = jnp.dot(xa.astype(mm_dtype), wa_ref[...], preferred_element_type=jnp.float32)
    acc = acc + jnp.dot(xb.astype(mm_dtype), wb_ref[...],
                        preferred_element_type=jnp.float32)
    out = rstd * (acc - mean * cs_ref[...]) + bias_ref[...]

    o_ref[...] = out.reshape(t_r, w2, out.shape[-1]).astype(o_ref.dtype)


def _tpu_vmem_budget():
    """(usable scoped-VMEM budget, physical capacity) — generation aware."""
    cap = 64 << 20                      # conservative fallback (v7x per-TC)
    try:
        cap = int(pltpu.get_tpu_info().vmem_capacity_bytes)
    except Exception:
        pass
    return int(0.75 * cap), cap


def _max_tokens_for_vmem(budget_bytes, d2, x_bytes, out_bytes, mm_bytes):
    d4 = 2 * d2
    fixed = 2 * (2 * d2 * d2 * mm_bytes) + 4 * d2 * 4 + (2 << 20)
    per_tok = 2 * d4 * x_bytes          # double-buffered input block
    per_tok += 2 * d2 * out_bytes       # double-buffered output block
    per_tok += d4 * mm_bytes            # matmul operand casts
    per_tok += d4 * 4                   # transient f32 for LN stats
    per_tok += d2 * 4                   # f32 accumulator / epilogue
    avail = max(budget_bytes - fixed, 4 << 20)
    return max(256, avail // max(1, per_tok))


def _pick_rows_per_step(n_rows, w2, target_tokens, min_steps=8):
    """Rows per grid step: ~target_tokens tokens/step, >= min_steps grid steps
    (so both v7x TensorCores get several pipelined steps), even step count when
    cheaply possible. No exact-divisor requirement (cdiv grid handles the rest)."""
    total = n_rows * w2
    steps = max(min_steps, pl.cdiv(total, max(1, target_tokens)))
    steps = min(steps, n_rows)
    if steps > 1 and steps % 2:
        steps = min(steps + 1, n_rows)
    return max(1, pl.cdiv(n_rows, steps))


def patch_merging_pallas(x, gamma, beta, w, input_resolution, *,
                         target_block_tokens=None,
                         matmul_dtype=jnp.bfloat16,
                         out_dtype=None):
    """x: (B, T, N, D) with N == H*W (f32 or bf16).
    w: (4*D, 2*D)  (PyTorch Linear(4D, 2D, bias=False).weight transposed).
    gamma, beta: (4*D,) LayerNorm affine params.
    Returns (B, T, N//4, 2*D); defaults to bf16 output on the bf16 MXU path."""
    H, W = input_resolution
    B, T, N, D = x.shape
    assert N == H * W, "input feature has wrong size"
    assert H % 2 == 0 and W % 2 == 0, f"x size ({H}*{W}) are not even."
    D2, D4 = 2 * D, 4 * D
    H2, W2 = H // 2, W // 2
    if out_dtype is None:
        out_dtype = (jnp.bfloat16
                     if jnp.dtype(matmul_dtype) == jnp.dtype(jnp.bfloat16)
                     else x.dtype)

    # --- trace-time parameter folding (exact, f32) ------------------------
    w32 = w.astype(jnp.float32)                               # (4D, 2D)
    wg = gamma.astype(jnp.float32)[:, None] * w32             # gamma folded in
    # kernel channel order: even source row -> [x0|x2], odd -> [x1|x3]
    wa = jnp.concatenate([wg[0:D], wg[2 * D:3 * D]], axis=0).astype(matmul_dtype)
    wb = jnp.concatenate([wg[D:2 * D], wg[3 * D:4 * D]], axis=0).astype(matmul_dtype)
    colsum = jnp.sum(wg, axis=0, keepdims=True)               # (1, 2D) f32
    bias = (beta.astype(jnp.float32) @ w32).reshape(1, D2)    # (1, 2D) f32

    # --- free reshape: (B,T,N,D) -> (B*T*H2, 2, W2, 2D); no HBM gather -----
    n_rows = B * T * H2
    xr = x.reshape(n_rows, 2, W2, D2)

    # Pad W2 up to a multiple of 8 so the in-kernel sublane merge is free and
    # tiles stay large (padded tokens are discarded after the call).
    W2p = -(-W2 // 8) * 8
    if W2p != W2:
        xr = jnp.pad(xr, ((0, 0), (0, 0), (0, W2p - W2), (0, 0)))

    x_itemsize = jnp.dtype(x.dtype).itemsize
    sub_align = 8 * max(1, 4 // max(1, x_itemsize))   # 8 for 32-bit, 16 for 16-bit
    cast_first = (W2p % sub_align) != 0

    budget, cap = _tpu_vmem_budget()
    if target_block_tokens is None:
        target_block_tokens = 4096 if cap >= (96 << 20) else 2048
    max_tok = _max_tokens_for_vmem(budget, D2, x_itemsize,
                                   jnp.dtype(out_dtype).itemsize,
                                   jnp.dtype(matmul_dtype).itemsize)
    target_tokens = max(256, min(target_block_tokens, max_tok))

    t_r = _pick_rows_per_step(n_rows, W2p, target_tokens)
    grid = pl.cdiv(n_rows, t_r)

    kernel = functools.partial(_patch_merging_kernel,
                               cast_before_reshape=cast_first)

    out = pl.pallas_call(
        kernel,
        out_shape=jax.ShapeDtypeStruct((n_rows, W2p, D2), out_dtype),
        grid_spec=pltpu.PrefetchScalarGridSpec(
            num_scalar_prefetch=0,
            grid=(grid,),
            in_specs=[
                pl.BlockSpec((t_r, 2, W2p, D2), lambda i: (i, 0, 0, 0)),
                pl.BlockSpec((D2, D2), lambda i: (0, 0)),
                pl.BlockSpec((D2, D2), lambda i: (0, 0)),
                pl.BlockSpec((1, D2), lambda i: (0, 0)),
                pl.BlockSpec((1, D2), lambda i: (0, 0)),
            ],
            out_specs=pl.BlockSpec((t_r, W2p, D2), lambda i: (i, 0, 0)),
        ),
        compiler_params=pltpu.CompilerParams(
            dimension_semantics=("parallel",),
            vmem_limit_bytes=budget,
        ),
    )(xr, wa, wb, colsum, bias)

    if W2p != W2:
        out = out[:, :W2, :]
    return out.reshape(B, T, H2 * W2, D2)


def patch_merging_ref(x, gamma, beta, w, input_resolution):
    """Pure-JAX reference replicating the PyTorch forward (f32 math)."""
    H, W = input_resolution
    B, T, N, D = x.shape
    x4 = x.reshape(B * T, H, W, D)
    x0 = x4[:, 0::2, 0::2, :]
    x1 = x4[:, 1::2, 0::2, :]
    x2 = x4[:, 0::2, 1::2, :]
    x3 = x4[:, 1::2, 1::2, :]
    xc = jnp.concatenate([x0, x1, x2, x3], axis=-1).reshape(B * T, -1, 4 * D)
    xc = xc.astype(jnp.float32)
    mean = jnp.mean(xc, axis=-1, keepdims=True)
    var = jnp.mean((xc - mean) ** 2, axis=-1, keepdims=True)
    xn = (xc - mean) / jnp.sqrt(var + LN_EPS) * gamma.astype(jnp.float32) \
        + beta.astype(jnp.float32)
    y = xn @ w.astype(jnp.float32)
    return y.reshape(B, T, -1, 2 * D)


if __name__ == "__main__":
    key = jax.random.PRNGKey(0)
    B, T, H, W, D = 2, 2, 16, 16, 32   # N = 256, 4D = 128, 2D = 64
    N = H * W

    kx, kw, kg = jax.random.split(key, 3)
    x = jax.random.normal(kx, (B, T, N, D), dtype=jnp.float32)
    # PyTorch Linear(4D, 2D, bias=False).weight is (2D, 4D); we store (4D, 2D).
    w = jax.random.normal(kw, (4 * D, 2 * D), dtype=jnp.float32) * 0.02
    gamma = 1.0 + 0.01 * jax.random.normal(kg, (4 * D,), dtype=jnp.float32)
    beta = 0.01 * jnp.ones((4 * D,), dtype=jnp.float32)

    ref = patch_merging_ref(x, gamma, beta, w, (H, W))

    # 1) Default fast path: bf16 MXU operands + bf16 output, epilogue-folded LN.
    out_fast = jax.block_until_ready(patch_merging_pallas(x, gamma, beta, w, (H, W)))
    assert out_fast.shape == (B, T, N // 4, 2 * D), out_fast.shape
    assert out_fast.dtype == jnp.bfloat16, out_fast.dtype
    err_fast = float(jnp.max(jnp.abs(out_fast.astype(jnp.float32) - ref)))
    assert err_fast < 3e-2, err_fast

    # 2) Exact path: f32 matmul operands + f32 output, tight tolerance.
    out_f32 = jax.block_until_ready(
        patch_merging_pallas(x, gamma, beta, w, (H, W), matmul_dtype=jnp.float32))
    assert out_f32.dtype == x.dtype, out_f32.dtype
    err_f32 = float(jnp.max(jnp.abs(out_f32 - ref)))
    assert err_f32 < 1e-4, err_f32

    # 3) bf16 input (halves the dominant HBM read stream).
    xb16 = x.astype(jnp.bfloat16)
    ref_b16 = patch_merging_ref(xb16.astype(jnp.float32), gamma, beta, w, (H, W))
    out_b16 = jax.block_until_ready(patch_merging_pallas(xb16, gamma, beta, w, (H, W)))
    err_b16 = float(jnp.max(jnp.abs(out_b16.astype(jnp.float32) - ref_b16)))
    assert err_b16 < 5e-2, err_b16

    # 4) W/2 not a multiple of 8 -> padded-width path, still full-size tiles.
    Ho, Wo = 12, 12
    xo = jax.random.normal(kx, (B, T, Ho * Wo, D), dtype=jnp.float32)
    ref_o = patch_merging_ref(xo, gamma, beta, w, (Ho, Wo))
    out_o = jax.block_until_ready(patch_merging_pallas(xo, gamma, beta, w, (Ho, Wo)))
    err_o = float(jnp.max(jnp.abs(out_o.astype(jnp.float32) - ref_o)))
    assert err_o < 3e-2, err_o

    print("KERNEL_OK")
</pallas_src>

<mosaic_0001>
module attributes {stable_mosaic.version = 11 : i64} {
  func.func @_patch_merging_kernel(%arg0: i32, %arg1: memref<4x2x8x64xf32, #tpu.memory_space<vmem>>, %arg2: memref<64x64xbf16, #tpu.memory_space<vmem>>, %arg3: memref<64x64xbf16, #tpu.memory_space<vmem>>, %arg4: memref<1x64xf32, #tpu.memory_space<vmem>>, %arg5: memref<1x64xf32, #tpu.memory_space<vmem>>, %arg6: memref<4x8x64xbf16, #tpu.memory_space<vmem>>) attributes {dimension_semantics = [#tpu.dimension_semantics<parallel>], iteration_bounds = array<i64: 8>, scalar_prefetch = 0 : i64, scratch_operands = 0 : i64, tpu.core_type = #tpu.core_type<tc>, window_params = [{transform_indices = @transform_0, window_bounds = array<i64: 4, 2, 8, 64>}, {pipeline_mode = #tpu.pipeline_mode<synchronous>, transform_indices = @transform_1, window_bounds = array<i64: 64, 64>}, {pipeline_mode = #tpu.pipeline_mode<synchronous>, transform_indices = @transform_2, window_bounds = array<i64: 64, 64>}, {pipeline_mode = #tpu.pipeline_mode<synchronous>, transform_indices = @transform_3, window_bounds = array<i64: 1, 64>}, {pipeline_mode = #tpu.pipeline_mode<synchronous>, transform_indices = @transform_4, window_bounds = array<i64: 1, 64>}, {transform_indices = @transform_5, window_bounds = array<i64: 4, 8, 64>}]} {
    %c0 = arith.constant 0 : index
    %c0_0 = arith.constant 0 : index
    %c0_1 = arith.constant 0 : index
    %c0_2 = arith.constant 0 : index
    %0 = vector.load %arg1[%c0, %c0_0, %c0_1, %c0_2] : memref<4x2x8x64xf32, #tpu.memory_space<vmem>>, vector<4x1x8x64xf32>
    %1 = vector.shape_cast %0 : vector<4x1x8x64xf32> to vector<4x8x64xf32>
    %c0_3 = arith.constant 0 : index
    %c1 = arith.constant 1 : index
    %c0_4 = arith.constant 0 : index
    %c0_5 = arith.constant 0 : index
    %2 = vector.load %arg1[%c0_3, %c1, %c0_4, %c0_5] : memref<4x2x8x64xf32, #tpu.memory_space<vmem>>, vector<4x1x8x64xf32>
    %3 = vector.shape_cast %2 : vector<4x1x8x64xf32> to vector<4x8x64xf32>
    %4 = vector.shape_cast %1 : vector<4x8x64xf32> to vector<32x64xf32>
    %5 = vector.shape_cast %3 : vector<4x8x64xf32> to vector<32x64xf32>
    %cst = arith.constant dense<0.000000e+00> : vector<32xf32>
    %6 = vector.multi_reduction <add>, %4, %cst [1] : vector<32x64xf32> to vector<32xf32>
    %7 = vector.shape_cast %6 : vector<32xf32> to vector<32x1xf32>
    %cst_6 = arith.constant dense<0.000000e+00> : vector<32xf32>
    %8 = vector.multi_reduction <add>, %5, %cst_6 [1] : vector<32x64xf32> to vector<32xf32>
    %9 = vector.shape_cast %8 : vector<32xf32> to vector<32x1xf32>
    %10 = arith.addf %7, %9 : vector<32x1xf32>
    %11 = arith.mulf %4, %4 : vector<32x64xf32>
    %cst_7 = arith.constant dense<0.000000e+00> : vector<32xf32>
    %12 = vector.multi_reduction <add>, %11, %cst_7 [1] : vector<32x64xf32> to vector<32xf32>
    %13 = vector.shape_cast %12 : vector<32xf32> to vector<32x1xf32>
    %14 = arith.mulf %5, %5 : vector<32x64xf32>
    %cst_8 = arith.constant dense<0.000000e+00> : vector<32xf32>
    %15 = vector.multi_reduction <add>, %14, %cst_8 [1] : vector<32x64xf32> to vector<32xf32>
    %16 = vector.shape_cast %15 : vector<32xf32> to vector<32x1xf32>
    %17 = arith.addf %13, %16 : vector<32x1xf32>
    %cst_9 = arith.constant 7.812500e-03 : f32
    %18 = vector.broadcast %cst_9 : f32 to vector<32x1xf32>
    %19 = arith.mulf %10, %18 : vector<32x1xf32>
    %cst_10 = arith.constant 7.812500e-03 : f32
    %20 = vector.broadcast %cst_10 : f32 to vector<32x1xf32>
    %21 = arith.mulf %17, %20 : vector<32x1xf32>
    %22 = arith.mulf %19, %19 : vector<32x1xf32>
    %23 = arith.subf %21, %22 : vector<32x1xf32>
    %cst_11 = arith.constant 9.99999974E-6 : f32
    %24 = vector.broadcast %cst_11 : f32 to vector<32x1xf32>
    %25 = arith.addf %23, %24 : vector<32x1xf32>
    %26 = math.rsqrt %25 : vector<32x1xf32>
    %27 = arith.truncf %4 : vector<32x64xf32> to vector<32x64xbf16>
    %c0_12 = arith.constant 0 : index
    %c0_13 = arith.constant 0 : index
    %28 = vector.load %arg2[%c0_12, %c0_13] : memref<64x64xbf16, #tpu.memory_space<vmem>>, vector<64x64xbf16>
    %cst_14 = arith.constant dense<0.000000e+00> : vector<32x64xf32>
    %29 = tpu.matmul %27, %28, %cst_14 {dimension_numbers = #tpu.dot_dimension_numbers<[1], [0], [0], [1], [0, 0, 1, 1], [], []>} : vector<32x64xbf16>, vector<64x64xbf16>, vector<32x64xf32> -> vector<32x64xf32>
    %30 = arith.truncf %5 : vector<32x64xf32> to vector<32x64xbf16>
    %c0_15 = arith.constant 0 : index
    %c0_16 = arith.constant 0 : index
    %31 = vector.load %arg3[%c0_15, %c0_16] : memref<64x64xbf16, #tpu.memory_space<vmem>>, vector<64x64xbf16>
    %cst_17 = arith.constant dense<0.000000e+00> : vector<32x64xf32>
    %32 = tpu.matmul %30, %31, %cst_17 {dimension_numbers = #tpu.dot_dimension_numbers<[1], [0], [0], [1], [0, 0, 1, 1], [], []>} : vector<32x64xbf16>, vector<64x64xbf16>, vector<32x64xf32> -> vector<32x64xf32>
    %33 = arith.addf %29, %32 : vector<32x64xf32>
    %c0_18 = arith.constant 0 : index
    %c0_19 = arith.constant 0 : index
    %34 = vector.load %arg4[%c0_18, %c0_19] : memref<1x64xf32, #tpu.memory_space<vmem>>, vector<1x64xf32>
    %35 = vector.broadcast %19 : vector<32x1xf32> to vector<32x64xf32>
    %36 = vector.broadcast %34 : vector<1x64xf32> to vector<32x64xf32>
    %37 = arith.mulf %35, %36 : vector<32x64xf32>
    %38 = arith.subf %33, %37 : vector<32x64xf32>
    %39 = vector.broadcast %26 : vector<32x1xf32> to vector<32x64xf32>
    %40 = arith.mulf %39, %38 : vector<32x64xf32>
    %c0_20 = arith.constant 0 : index
    %c0_21 = arith.constant 0 : index
    %41 = vector.load %arg5[%c0_20, %c0_21] : memref<1x64xf32, #tpu.memory_space<vmem>>, vector<1x64xf32>
    %42 = vector.broadcast %41 : vector<1x64xf32> to vector<32x64xf32>
    %43 = arith.addf %40, %42 : vector<32x64xf32>
    %44 = vector.shape_cast %43 : vector<32x64xf32> to vector<4x8x64xf32>
    %45 = arith.truncf %44 : vector<4x8x64xf32> to vector<4x8x64xbf16>
    %c0_22 = arith.constant 0 : index
    %c0_23 = arith.constant 0 : index
    %c0_24 = arith.constant 0 : index
    %46 = vector.load %arg6[%c0_22, %c0_23, %c0_24] : memref<4x8x64xbf16, #tpu.memory_space<vmem>>, vector<4x8x64xbf16>
    tpu.vector_store %arg6[%c0_22, %c0_23, %c0_24], %45 {strides = array<i32>} : memref<4x8x64xbf16, #tpu.memory_space<vmem>>, vector<4x8x64xbf16>,
    return
  }
  func.func @transform_0(%arg0: i32) -> (i32, i32, i32, i32) {
    %c0_i32 = arith.constant 0 : i32
    %c0_i32_0 = arith.constant 0 : i32
    %c0_i32_1 = arith.constant 0 : i32
    %c0_i32_2 = arith.constant 0 : i32
    return %arg0, %c0_i32, %c0_i32_0, %c0_i32_1 : i32, i32, i32, i32
  }
  func.func @transform_1(%arg0: i32) -> (i32, i32) {
    %c0_i32 = arith.constant 0 : i32
    %c0_i32_0 = arith.constant 0 : i32
    %c0_i32_1 = arith.constant 0 : i32
    return %c0_i32, %c0_i32_0 : i32, i32
  }
  func.func @transform_2(%arg0: i32) -> (i32, i32) {
    %c0_i32 = arith.constant 0 : i32
    %c0_i32_0 = arith.constant 0 : i32
    %c0_i32_1 = arith.constant 0 : i32
    return %c0_i32, %c0_i32_0 : i32, i32
  }
  func.func @transform_3(%arg0: i32) -> (i32, i32) {
    %c0_i32 = arith.constant 0 : i32
    %c0_i32_0 = arith.constant 0 : i32
    %c0_i32_1 = arith.constant 0 : i32
    return %c0_i32, %c0_i32_0 : i32, i32
  }
  func.func @transform_4(%arg0: i32) -> (i32, i32) {
    %c0_i32 = arith.constant 0 : i32
    %c0_i32_0 = arith.constant 0 : i32
    %c0_i32_1 = arith.constant 0 : i32
    return %c0_i32, %c0_i32_0 : i32, i32
  }
  func.func @transform_5(%arg0: i32) -> (i32, i32, i32) {
    %c0_i32 = arith.constant 0 : i32
    %c0_i32_0 = arith.constant 0 : i32
    %c0_i32_1 = arith.constant 0 : i32
    return %arg0, %c0_i32, %c0_i32_0 : i32, i32, i32
  }
}

</mosaic_0001>

<bundles_post_ra>
// kernel: tpu_custom_call.1
= control target key start
LH: loop header
LB: loop body
LE: loop exit
PB: predicated region body
PF: predicated region fallthrough
CT: control target
= control target key end

     0   :  { %10 = vsyncpa [#allocation3], 0  ;;  %s1330_s0 = inlined_call_operand.hbm [shape: f32[32,2,8,64], index: 0, kind: input, shape index: {}]   ;;  %s1331_s1 = inlined_call_operand.hbm [shape: bf16[64,64], index: 1, kind: input, shape index: {}]   ;;  %s1332_s2 = inlined_call_operand.hbm [shape: bf16[64,64], index: 2, kind: input, shape index: {}]   ;;  %s1333_s3 = inlined_call_operand.vmem [shape: f32[1,64], index: 3, kind: input, shape index: {}]   ;;  %s1334_s4 = inlined_call_operand.vmem [shape: f32[1,64], index: 4, kind: input, shape index: {}]   ;;  %s1335_s5 = inlined_call_operand.hbm [shape: bf16[32,8,64], index: 5, kind: output, shape index: {}]  }
   0x1   :  { %12 = vsyncpa [#allocation3 + $0x1], 0 }
   0x2   :  { %13 = vsyncpa [#allocation6], 0 }
   0x3   :  { %14 = vsyncpa [#allocation4], 0 }
   0x4   :  { %16 = vsyncpa [#allocation4 + $0x1], 0  ;;  %s1064_s18 = smov 0   ;;  %s1066_s19 = smov 0  }
   0x5   :  { %s1068_s20 = smov 0   ;;  %s1070_s21 = smov 0  }
   0x6 LB: > { %s1085_s22 = sadd.s32 4294967295, %s1022_s21   ;;  %s697_s23 = sadd.s32 4294967294, %s1022_s21   ;;  %s1022_s21 = sphi %s1070_s21, %s1354_s21   ;;  %s1018_s20 = sphi %s1068_s20, %s1353_s20   ;;  %s1014_s19 = sphi %s1066_s19, %s1352_s19   ;;  %s1010_s18 = sphi %s1064_s18, %s1351_s18  }
   0x7   : > { %p42_p0 = scmp.ne.s32.totalorder %s1014_s19, %s1010_s18  ;;  %p1336_p1 = scmp.eq.s32.totalorder %s1085_s22, 0 }
   0x8   : > { %p156_p3 = scmp.eq.s32.totalorder %s697_s23, 7  ;;  %p698_p5 = scmp.ge.s32.totalorder %s1022_s21, 1 }
   0x9   : > { %p1094_p4 = por %p1336_p1, %p42_p0  ;;  %p163_p7 = scmp.lt.s32.totalorder %s1022_s21, 9 }
   0xa   : > { %p1099_p6 = por %p156_p3, %p42_p0  ;;  %s1024_s27 = smov [#allocation5]  }
   0xb   : > { %s1339_s24 = scalar_select %p1094_p4, 1, 0 }
   0xc   : > { %s1340_s25 = scalar_select %p1099_p6, 1, 0 }
   0xd   : > { %p1104_p8 = pnand %p698_p5, %p163_p7  ;;  %s175_s28 = sshll.u32 %s1024_s27, 4  ;;  %s176_s28 = int_to_ptr.vmem [resolvable:$true] %s175_s28 }
   0xe   : > { %s1025_s30 = smov [#allocation7]   ;;  %s866_s9 = scalar_lea.hbm %s1331_s1, 512 }
   0xf   : > { %s1341_s26 = scalar_select %p1104_p8, 1, 0 }
  0x10   : > { %p789_p9 = pneg %p1104_p8  ;;  %s188_s6 = sshll.u32 %s1025_s30, 4  ;;  %s1116_s6 = int_to_ptr.vmem [resolvable:$true] %s188_s6 }
  0x11   : > { %p867_p11 = scmp.ne.s32.totalorder %s1331_s1, %s866_s9  ;;  %p873_p3 = scmp.lt.u32.totalorder %s866_s9, %s1331_s1 }
  0x12   : > { %p1112_p10 = pnand %p789_p9, %p1336_p1 }
  0x14   : > { %p868_p12 = pneg %p1112_p10 }
  0x16   : > { %p869_p13 = pnand %p868_p12, %p867_p11 }
  0x18   : > { %p870_p0 = pneg %p869_p13 }
  0x1a   : > { %p875_p5 = pnand %p873_p3, %p870_p0 }
  0x1c   : > { %878 = shalt.err (!%p875_p5)
}
  0x1d   : > { %s879_s14 = scalar_lea.vmem %s176_s28, 512  ;;  %p887_p2 = scmp.lt.s32.totalorder %s176_s28, %s176_s28 }
  0x1e   : > { %p880_p7 = scmp.ne.s32.totalorder %s176_s28, %s879_s14  ;;  %p888_p6 = scmp.lt.s32.totalorder %s879_s14, %s879_s14 }
  0x20   : > { %p882_p9 = pnand %p880_p7, %p868_p12  ;;  %p889_p4 = por %p888_p6, %p887_p2 }
  0x22   : > { %p883_p1 = pneg %p882_p9 }
  0x24   : > { %p890_p8 = pnand %p889_p4, %p883_p1 }
  0x26   : > { %893 = shalt.err (!%p890_p8)
}
  0x27   : > { %s1026_s15 = smov 64   ;;  %s1027_s16 = smov 4  }
  0x28   : > { %792 = dma.hbm_to_vmem [thread:$0]  (!%p1112_p10), %s1331_s1, 512, %s176_s28, [#allocation6], %s1026_s15, %s1026_s15, %s1027_s16  }
  0x29   : > { %s894_s7 = scalar_lea.hbm %s1332_s2, 512 }
  0x2a   : > { %p895_p11 = scmp.ne.s32.totalorder %s1332_s2, %s894_s7  ;;  %p901_p4 = scmp.lt.u32.totalorder %s894_s7, %s1332_s2 }
  0x2c   : > { %p897_p1 = pnand %p895_p11, %p868_p12 }
  0x2e   : > { %p898_p2 = pneg %p897_p1 }
  0x30   : > { %p903_p6 = pnand %p901_p4, %p898_p2 }
  0x32   : > { %906 = shalt.err (!%p903_p6)
}
  0x33   : > { %s907_s28 = scalar_lea.vmem %s1116_s6, 512  ;;  %p915_p3 = scmp.lt.s32.totalorder %s1116_s6, %s1116_s6 }
  0x34   : > { %p908_p8 = scmp.ne.s32.totalorder %s1116_s6, %s907_s28  ;;  %p916_p5 = scmp.lt.s32.totalorder %s907_s28, %s907_s28 }
  0x36   : > { %p910_p13 = pnand %p908_p8, %p868_p12  ;;  %p917_p7 = por %p916_p5, %p915_p3 }
  0x38   : > { %p911_p0 = pneg %p910_p13 }
  0x3a   : > { %p918_p9 = pnand %p917_p7, %p911_p0 }
  0x3c   : > { %921 = shalt.err (!%p918_p9)
}
  0x3d   : > { %795 = dma.hbm_to_vmem [thread:$0]  (!%p1112_p10), %s1332_s2, 512, %s1116_s6, [#allocation6], %s1026_s15, %s1026_s15, %s1027_s16  }
  0x3e   : > { %s1166_s14 = sadd.s32 1, %s1022_s21   ;;  %s29_s29 = sadd.s32 1, %s1018_s20 }
  0x3f   : > { %s26_s17 = ssub.s32 %s1022_s21, %s1166_s14  ;;  %p36_p12 = scmp.ne.s32.totalorder %s1018_s20, %s1014_s19 }
  0x40   : > { %p27_p11 = scmp.eq.s32.totalorder %s26_s17, 0  ;;  %p37_p1 = scmp.eq.s32.totalorder %s1022_s21, 0 }
  0x41   : > { %p1343_p2 = scmp.eq.s32.totalorder %s1085_s22, 7  ;;  %p806_p6 = scmp.lt.s32.totalorder %s1022_s21, 8 }
  0x42   : > { %s1182_s27 = scalar_select %p27_p11, %s1018_s20, %s29_s29  }
  0x43   : > { %p1176_p4 = por %p1343_p2, %p36_p12  ;;  %p38_p8 = por %p37_p1, %p36_p12 }
  0x44   : > { %s208_s30 = sand.u32 1, %s1018_s20   ;;  %s735_s6 = sshll.u32 %s1022_s21, 10 }
  0x45   : > { %s702_s7 = sshll.u32 %s208_s30, 6  ;;  %s1189_s8 = scalar_lea.hbm %s1330_s0, %s735_s6 }
  0x46   : > { %s212_s9 = scalar_lea.vmem [#allocation2], %s702_s7  ;;  %p1193_p10 = pnand %p806_p6, %p38_p8 }
  0x47   : > { %s220_s10 = sshll.u32 %s212_s9, 4  ;;  %s1197_s28 = scalar_lea.sflag [#allocation3], %s208_s30  ;;  %s1191_s10 = int_to_ptr.vmem [resolvable:$true] %s220_s10 }
  0x48   : > { %s922_s12 = scalar_lea.hbm %s1189_s8, 1024  ;;  %p924_p0 = pneg %p1193_p10 }
  0x49   : > { %p923_p13 = scmp.ne.s32.totalorder %s1189_s8, %s922_s12  ;;  %s927_s17 = scalar_lea.hbm %s1330_s0, 8192 }
  0x4a   : > { %p928_p7 = scmp.lt.u32.totalorder %s1189_s8, %s1330_s0  ;;  %p929_p9 = scmp.lt.u32.totalorder %s927_s17, %s922_s12 }
  0x4b   : > { %p925_p3 = pnand %p924_p0, %p923_p13  ;;  %p931_p11 = scmp.lt.u32.totalorder %s922_s12, %s1189_s8 }
  0x4c   : > { %p930_p12 = por %p929_p9, %p928_p7 }
  0x4d   : > { %p926_p5 = pneg %p925_p3 }
  0x4e   : > { %p932_p1 = por %p931_p11, %p930_p12 }
  0x50   : > { %p933_p2 = pnand %p932_p1, %p926_p5 }
  0x52   : > { %936 = shalt.err (!%p933_p2)
}
  0x53   : > { %s937_s30 = scalar_lea.vmem %s1191_s10, 1024  ;;  %s1028_s15 = smov [#allocation2]  }
  0x54   : > { %p938_p6 = scmp.ne.s32.totalorder %s1191_s10, %s937_s30  ;;  %s942_s16 = sshll.u32 %s1028_s15, 4  ;;  %s943_s16 = int_to_ptr.vmem [resolvable:$false] %s942_s16 }
  0x55   : > { %s944_s9 = scalar_lea.vmem %s943_s16, 2048  ;;  %p945_p3 = scmp.lt.s32.totalorder %s1191_s10, %s943_s16 }
  0x56   : > { %p940_p8 = pnand %p938_p6, %p924_p0  ;;  %p946_p7 = scmp.lt.s32.totalorder %s944_s9, %s937_s30 }
  0x58   : > { %p941_p13 = pneg %p940_p8  ;;  %p947_p9 = por %p946_p7, %p945_p3 }
  0x5a   : > { %p948_p12 = pnand %p947_p9, %p941_p13 }
  0x5c   : > { %951 = shalt.err (!%p948_p12)
}
  0x5d   : > { %s1029_s12 = smov 128   ;;  %s1030_s13 = smov 8  }
  0x5e   : > { %799 = dma.hbm_to_vmem [thread:$0]  (!%p1193_p10), %s1189_s8, 1024, %s1191_s10, %s1197_s28, %s1029_s12, %s1029_s12, %s1030_s13  }
  0x5f   : > { %p1346_p0 = scmp.ne.s32.totalorder %s1341_s26, 0 }
  0x60   : > { %s1228_s29 = sand.u32 (!%p1346_p0), 1, %s1014_s19   ;;  %p1347_p5 = scmp.ne.s32.totalorder (!%p1346_p0), %s1339_s24, 0 }
  0x61   : > { %232 = sbr.rel (%p1346_p0) target bundleno = 366 (0x16e), region = 40  ;;  %s707_s17 = sshll.u32 (!%p1346_p0), %s1228_s29, 6 }
  0x62   : > { %s235_s7 = scalar_lea.sflag (!%p1346_p0), [#allocation3], %s1228_s29  ;;  %s1232_s6 = scalar_lea.vmem (!%p1346_p0), [#allocation2], %s707_s17 }
  0x68   : > { %997 = dma.done.wait (%p1347_p5), %s235_s7, 1024  }
  0x69   : > { %999 = vsyncadd (%p1347_p5), %s235_s7, 4294966272  ;;  %p1348_p10 = scmp.eq.s32.totalorder %s1085_s22, 0 }
  0x6b   : > { %1001 = dma.done.wait (%p1348_p10), [#allocation6], 1024   ;;  %p1349_p11 = pmov %p1348_p10 }
  0x6c   : > { %v850_v0 = vld [vmem:[#allocation7] sm:$0xff]   ;;  %v852_v2 = vld [vmem:[#allocation7 + $0x8] sm:$0xff]   ;;  %v854_v4 = vld [vmem:[#allocation7 + $0x10] sm:$0xff]   ;;  %vm285_vm0 = vcmask 523264   ;;  %s710_s8 = sshll.u32 %s1228_s29, 4  ;;  %vm586_vm1 = vcmask 519168  }
  0x6d   : > { %1003 = vsyncadd (%p1349_p11), [#allocation6], 4294966272  ;;  %v851_v1 = vld [vmem:[#allocation5] sm:$0xff]   ;;  %749 = vmatprep.subr.bf16.mxu1 %v850_v0  ;;  %v853_v3 = vld [vmem:[#allocation5 + $0x8] sm:$0xff]   ;;  %s736_s28 = sshll.u32 %s1085_s22, 8  ;;  %s272_s30 = scalar_lea.vmem [#allocation8], %s710_s8 }
  0x6e   : > { %761 = vmatprep.subr.bf16.mxu0 %v851_v1  ;;  %750 = vmatpush3.bf16.msra.mxu1 %v850_v0  ;;  %v855_v5 = vld [vmem:[#allocation5 + $0x10] sm:$0xff]   ;;  %v856_v6 = vld [vmem:[#allocation7 + $0x18] sm:$0xff]   ;;  %v711_v7 = vld [vmem:[%s1232_s6 + $0x8] sm:$0xff]  ;;  %s605_s15 = sshll.u32 %s272_s30, 4  ;;  %s1282_s12 = scalar_lea.hbm %s1335_s5, %s736_s28  ;;  %s1284_s15 = int_to_ptr.vmem [resolvable:$true] %s605_s15 }
  0x6f   : > { %762 = vmatpush3.bf16.msra.mxu0 %v851_v1  ;;  %751 = vmatprep.subr.bf16.mxu1 %v852_v2  ;;  %v712_v8 = vld [vmem:[%s1232_s6 + $0x18] sm:$0xff]  ;;  %v276_v9 = vld [vmem:[%s1232_s6] sm:$0xff]  ;;  %v277_v12 = vld [vmem:[%s1232_s6 + $0x10] sm:$0xff]  ;;  %v298_v24 = vsel %vm285_vm0, %v711_v7, 0.0  ;;  %v330_v35 = vmul.f32 %v711_v7, %v711_v7  ;;  %s592_s22 = scalar_lea.sflag [#allocation4], %s1228_s29  ;;  %s952_s13 = scalar_lea.vmem %s1284_s15, 256 }
  0x70   : > { %763 = vmatprep.subr.bf16.mxu0 %v853_v3  ;;  %v857_v10 = vld [vmem:[#allocation5 + $0x18] sm:$0xff]   ;;  %v384_v11 = vpack.c.bf16 %v712_v8, %v711_v7  ;;  %v286_v13 = vsel %vm285_vm0, %v276_v9, 0.0  ;;  %v374_v14 = vpack.c.bf16 %v277_v12, %v276_v9  ;;  %v278_v15 = vld [vmem:[%s1232_s6 + $0x20] sm:$0xff]  ;;  %v713_v16 = vld [vmem:[%s1232_s6 + $0x28] sm:$0xff]  ;;  %v289_v19 = vsel %vm285_vm0, %v277_v12, 0.0  ;;  %p953_p1 = scmp.ne.s32.totalorder %s1284_s15, %s952_s13  ;;  %s1031_s17 = smov [#allocation8]  }
  0x71   : > { %287 = vadd.xlane.f32.xlu0 %v286_v13  ;;  %v714_v17 = vld [vmem:[%s1232_s6 + $0x38] sm:$0xff]  ;;  %v292_v18 = vsel %vm285_vm0, %v278_v15, 0.0  ;;  %v279_v20 = vld [vmem:[%s1232_s6 + $0x30] sm:$0xff]  ;;  %v301_v25 = vsel %vm285_vm0, %v712_v8, 0.0  ;;  %v304_v26 = vsel %vm285_vm0, %v713_v16, 0.0  ;;  %v314_v27 = vmul.f32 %v276_v9, %v276_v9  ;;  %s956_s7 = sshll.u32 %s1031_s17, 4  ;;  %s957_s7 = int_to_ptr.vmem [resolvable:$false] %s956_s7 }
  0x72   : > { %752 = vmatpush3.bf16.msra.mxu1 %v852_v2  ;;  %757 = vmatprep.mubr.msk.bf16.mxu1 %vm285_vm0, %v384_v11  ;;  %v385_v21 = vpack.c.bf16 %v714_v17, %v713_v16  ;;  %v375_v22 = vpack.c.bf16 %v279_v20, %v278_v15  ;;  %v295_v23 = vsel %vm285_vm0, %v279_v20, 0.0  ;;  %v307_v28 = vsel %vm285_vm0, %v714_v17, 0.0  ;;  %p954_p2 = pnand %p953_p1, %p1176_p4  ;;  %s958_s6 = scalar_lea.vmem %s957_s7, 512 }
  0x73   : > { %764 = vmatpush3.bf16.msra.mxu0 %v853_v3  ;;  %753 = vmatprep.subr.bf16.mxu1 %v854_v4  ;;  %v315_v29 = vmul.f32 %v277_v12, %v277_v12  ;;  %v318_v30 = vsel %vm285_vm0, %v314_v27, 0.0  ;;  %v316_v31 = vmul.f32 %v278_v15, %v278_v15  ;;  %v317_v33 = vmul.f32 %v279_v20, %v279_v20  ;;  %p959_p8 = scmp.lt.s32.totalorder %s1284_s15, %s957_s7  ;;  %p960_p13 = scmp.lt.s32.totalorder %s958_s6, %s952_s13 }
  0x74   : > { %765 = vmatprep.subr.bf16.mxu0 %v855_v5  ;;  %769 = vmatprep.mubr.msk.bf16.mxu0 %vm285_vm0, %v374_v14  ;;  %v331_v37 = vmul.f32 %v712_v8, %v712_v8  ;;  %v334_v38 = vsel %vm285_vm0, %v330_v35, 0.0  ;;  %v332_v39 = vmul.f32 %v713_v16, %v713_v16  ;;  %v333_v41 = vmul.f32 %v714_v17, %v714_v17  ;;  %p955_p6 = pneg %p954_p2 }
  0x75   : > { %293 = vadd.xlane.f32.xlu1 %v292_v18  ;;  %290 = vadd.xlane.f32.xlu0 %v289_v19  ;;  %v321_v32 = vsel %vm285_vm0, %v315_v29, 0.0  ;;  %v324_v34 = vsel %vm285_vm0, %v316_v31, 0.0  ;;  %v327_v36 = vsel %vm285_vm0, %v317_v33, 0.0  ;;  %p961_p3 = por %p960_p13, %p959_p8 }
  0x76   : > { %754 = vmatpush3.bf16.msra.mxu1 %v854_v4  ;;  %v337_v40 = vsel %vm285_vm0, %v331_v37, 0.0  ;;  %v340_v42 = vsel %vm285_vm0, %v332_v39, 0.0  ;;  %v343_v43 = vsel %vm285_vm0, %v333_v41, 0.0 }
  0x77   : > { %766 = vmatpush3.bf16.msra.mxu0 %v855_v5  ;;  %755 = vmatprep.subr.bf16.mxu1 %v856_v6  ;;  %p962_p7 = pnand %p961_p3, %p955_p6 }
  0x78   : > { %767 = vmatprep.subr.bf16.mxu0 %v857_v10 }
  0x79   : > { %296 = vadd.xlane.f32.xlu1 %v295_v23  ;;  %299 = vadd.xlane.f32.xlu0 %v298_v24  ;;  %v727_v24 = vld [vmem:[%s1333_s3] ss:$0 sm:$0xff] }
  0x7a   : > { %756 = vmatpush3.bf16.msra.mxu1 %v856_v6 }
  0x7b   : > { %768 = vmatpush3.bf16.msra.mxu0 %v857_v10 }
  0x7d   : > { %758 = vmatmul.mubr.msk.bf16.vlgmr.msra.gmra.mrb[0].mxu1 %vm285_vm0, %v385_v21  ;;  %302 = vadd.xlane.f32.xlu1 %v301_v25 }
  0x7e   : > { %770 = vmatmul.mubr.msk.bf16.vlgmr.msra.gmra.mrb[0].mxu0 %vm285_vm0, %v375_v22  ;;  %305 = vadd.xlane.f32.xlu0 %v304_v26 }
  0x81   : > { %308 = vadd.xlane.f32.xlu1 %v307_v28 }
  0x82   : > { %319 = vadd.xlane.f32.xlu0 %v318_v30 }
  0x85   : > { %322 = vadd.xlane.f32.xlu1 %v321_v32 }
  0x86   : > { %325 = vadd.xlane.f32.xlu0 %v324_v34 }
  0x89   : > { %328 = vadd.xlane.f32.xlu1 %v327_v36 }
  0x8a   : > { %335 = vadd.xlane.f32.xlu0 %v334_v38 }
  0x8d   : > { %338 = vadd.xlane.f32.xlu1 %v337_v40 }
  0x8e   : > { %341 = vadd.xlane.f32.xlu0 %v340_v42  ;;  %v728_v42 = vld [vmem:[%s1334_s4] ss:$0 sm:$0xff] }
  0x91   : > { %344 = vadd.xlane.f32.xlu1 %v343_v43 }
  0xfe   : > { %v288_v44 = vpop.xlane.xlu0 %287 }
 0x102   : > { %v294_v45 = vpop.xlane.xlu1 %293  ;;  %v291_v46 = vpop.xlane.xlu0 %290 }
 0x106   : > { %v297_v47 = vpop.xlane.xlu1 %296  ;;  %v300_v48 = vpop.xlane.xlu0 %299 }
 0x107   : > { %v310_v59 = vadd.f32 %v300_v48, %v288_v44 }
 0x109   : > { %v350_v2 = vmul.f32 0.0078125, %v310_v59 }
 0x10a   : > { %v303_v49 = vpop.xlane.xlu1 %302 }
 0x10b   : > { %v306_v50 = vpop.xlane.xlu0 %305  ;;  %v311_v62 = vadd.f32 %v303_v49, %v291_v46  ;;  %v358_v10 = vmul.f32 %v350_v2, %v350_v2  ;;  %v559_v32 = vmul.f32 %v727_v24, %v350_v2 }
 0x10c   : > { %v312_v58 = vadd.f32 %v306_v50, %v294_v45 }
 0x10d   : > { %v351_v6 = vmul.f32 0.0078125, %v311_v62 }
 0x10e   : > { %v309_v51 = vpop.xlane.xlu1 %308  ;;  %v352_v0 = vmul.f32 0.0078125, %v312_v58 }
 0x10f   : > { %v320_v52 = vpop.xlane.xlu0 %319  ;;  %v313_v61 = vadd.f32 %v309_v51, %v297_v47  ;;  %v359_v14 = vmul.f32 %v351_v6, %v351_v6  ;;  %v560_v41 = vmul.f32 %v727_v24, %v351_v6 }
 0x110   : > { %v360_v8 = vmul.f32 %v352_v0, %v352_v0  ;;  %v561_v28 = vmul.f32 %v727_v24, %v352_v0 }
 0x111   : > { %v353_v4 = vmul.f32 0.0078125, %v313_v61 }
 0x112   : > { %v323_v53 = vpop.xlane.xlu1 %322 }
 0x113   : > { %v326_v54 = vpop.xlane.xlu0 %325  ;;  %v361_v12 = vmul.f32 %v353_v4, %v353_v4  ;;  %v562_v36 = vmul.f32 %v727_v24, %v353_v4 }
 0x116   : > { %v329_v55 = vpop.xlane.xlu1 %328 }
 0x117   : > { %v336_v56 = vpop.xlane.xlu0 %335 }
 0x118   : > { %v346_v3 = vadd.f32 %v336_v56, %v320_v52 }
 0x11a   : > { %v339_v57 = vpop.xlane.xlu1 %338  ;;  %v354_v11 = vmul.f32 0.0078125, %v346_v3 }
 0x11b   : > { %v342_v60 = vpop.xlane.xlu0 %341  ;;  %v347_v7 = vadd.f32 %v339_v57, %v323_v53 }
 0x11c   : > { %v348_v1 = vadd.f32 %v342_v60, %v326_v54  ;;  %v362_v17 = vsub.f32 %v354_v11, %v358_v10 }
 0x11d   : > { %v355_v15 = vmul.f32 0.0078125, %v347_v7 }
 0x11e   : > { %v345_v63 = vpop.xlane.xlu1 %344  ;;  %v356_v9 = vmul.f32 0.0078125, %v348_v1  ;;  %v366_v21 = vadd.f32 1e-05, %v362_v17 }
 0x11f   : > { %v349_v5 = vadd.f32 %v345_v63, %v329_v55  ;;  %v363_v19 = vsub.f32 %v355_v15, %v359_v14 }
 0x120   : > { %v364_v16 = vsub.f32 %v356_v9, %v360_v8 }
 0x121   : > { %v357_v13 = vmul.f32 0.0078125, %v349_v5  ;;  %v367_v23 = vadd.f32 1e-05, %v363_v19 }
 0x122   : > { %v368_v20 = vadd.f32 1e-05, %v364_v16 }
 0x123   : > { %v365_v18 = vsub.f32 %v357_v13, %v361_v12 }
 0x124   : > { %858 = vrsqrt.f32 %v368_v20 }
 0x125   : > { %v369_v22 = vadd.f32 1e-05, %v365_v18  ;;  %860 = vrsqrt.f32 %v366_v21 }
 0x127   : > { %862 = vrsqrt.f32 %v369_v22 }
 0x128   : > { %864 = vrsqrt.f32 %v367_v23 }
 0x12e   : > { %v859_v40 = vpop.eup %858 }
 0x12f   : > { %v861_v45 = vpop.eup %860 }
 0x131   : > { %v863_v48 = vpop.eup %862 }
 0x132   : > { %v865_v51 = vpop.eup %864 }
 0x150   : > { %v759_v25 = vpop.f32.mrb[0].mxu1 }
 0x151   : > { %v771_v26 = vpop.f32.mrb[0].mxu0  ;;  %v458_v27 = vpop.f32.mrb[1].mxu1 }
 0x152   : > { %v546_v29 = vadd.f32 %v771_v26, %v759_v25  ;;  %v537_v30 = vpop.f32.mrb[1].mxu0  ;;  %v760_v31 = vpop.f32.mrb[2].mxu1 }
 0x153   : > { %v538_v33 = vadd.f32 %v537_v30, %v458_v27  ;;  %v772_v34 = vpop.f32.mrb[2].mxu0  ;;  %v461_v35 = vpop.f32.mrb[3].mxu1 }
 0x154   : > { %v565_v37 = vsub.f32 %v546_v29, %v561_v28  ;;  %v549_v38 = vadd.f32 %v772_v34, %v760_v31  ;;  %v540_v39 = vpop.f32.mrb[3].mxu0 }
 0x155   : > { %v563_v43 = vsub.f32 %v538_v33, %v559_v32  ;;  %v541_v44 = vadd.f32 %v540_v39, %v461_v35 }
 0x156   : > { %v569_v46 = vmul.f32 %v859_v40, %v565_v37  ;;  %v566_v47 = vsub.f32 %v549_v38, %v562_v36 }
 0x157   : > { %v567_v49 = vmul.f32 %v861_v45, %v563_v43  ;;  %v564_v50 = vsub.f32 %v541_v44, %v560_v41 }
 0x158   : > { %v580_v52 = vadd.f32 %v728_v42, %v569_v46  ;;  %v570_v53 = vmul.f32 %v863_v48, %v566_v47 }
 0x159   : > { %v578_v54 = vadd.f32 %v728_v42, %v567_v49  ;;  %v568_v55 = vmul.f32 %v865_v51, %v564_v50 }
 0x15a   : > { %v584_v56 = vpack.c.bf16 %v580_v52, %v580_v52  ;;  %v581_v57 = vadd.f32 %v728_v42, %v570_v53 }
 0x15b   : > { %v582_v58 = vpack.c.bf16 %v578_v54, %v578_v54  ;;  %v579_v59 = vadd.f32 %v728_v42, %v568_v55 }
 0x15c   : > { %589 = vst.msk [vmem:[%s272_s30 + $0x8] sm:$0xf] %vm586_vm1, %v584_v56  ;;  %v585_v60 = vpack.c.bf16 %v581_v57, %v581_v57 }
 0x15d   : > { %587 = vst.msk [vmem:[%s272_s30] sm:$0xf] %vm586_vm1, %v582_v58  ;;  %v583_v61 = vpack.c.bf16 %v579_v59, %v579_v59 }
 0x15e   : > { %590 = vst.msk [vmem:[%s272_s30 + $0xc] sm:$0xf] %vm586_vm1, %v585_v60 }
 0x15f   : > { %588 = vst.msk [vmem:[%s272_s30 + $0x4] sm:$0xf] %vm586_vm1, %v583_v61 }
 0x160   : > { %965 = shalt.err (!%p962_p7)
}
 0x161   : > { %s966_s24 = scalar_lea.hbm %s1282_s12, 256  ;;  %s970_s10 = scalar_lea.hbm %s1335_s5, 2048 }
 0x162   : > { %p967_p9 = scmp.ne.s32.totalorder %s1282_s12, %s966_s24  ;;  %p971_p5 = scmp.lt.u32.totalorder %s1282_s12, %s1335_s5 }
 0x163   : > { %p972_p10 = scmp.lt.u32.totalorder %s970_s10, %s966_s24  ;;  %p974_p1 = scmp.lt.u32.totalorder %s966_s24, %s1282_s12 }
 0x164   : > { %p968_p12 = pnand %p967_p9, %p1176_p4 }
 0x165   : > { %p973_p11 = por %p972_p10, %p971_p5 }
 0x166   : > { %p969_p0 = pneg %p968_p12 }
 0x167   : > { %p975_p2 = por %p974_p1, %p973_p11 }
 0x169   : > { %p976_p6 = pnand %p975_p2, %p969_p0 }
 0x16b   : > { %979 = shalt.err (!%p976_p6)
}
 0x16c   : > { %s1032_s30 = smov 64   ;;  %s1033_s16 = smov 4  }
 0x16d   : > { %787 = dma.vmem_to_hbm [thread:$0]  (%p1176_p4), %s1284_s15, 256, %s1282_s12, %s592_s22, %s1032_s30, %s1032_s30, %s1033_s16  }
 0x16e PF: > { %p809_p8 = scmp.ge.s32.totalorder %s1022_s21, 2  ;;  %s620_s9 = sand.u32 1, %s1010_s18  }
 0x16f   : > { %p1350_p13 = scmp.ne.s32.totalorder %s1340_s25, 0  ;;  %s621_s13 = scalar_lea.sflag [#allocation4], %s620_s9 }
 0x171   : > { %p801_p3 = pnand %p809_p8, %p1350_p13 }
 0x173   : > { %1005 = dma.done.wait (!%p801_p3), %s621_s13, 256  }
 0x174   : > { %1007 = vsyncadd (!%p801_p3), %s621_s13, 4294967040  ;;  %p19_p7 = scmp.ge.s32.totalorder %s1166_s14, 10   ;;  %s1351_s18 = smov %s1014_s19 }
 0x175   : > { %s1352_s19 = smov %s1018_s20  ;;  %s1353_s20 = smov %s1182_s27 }
 0x176   : > { %s1354_s21 = smov %s1166_s14  ;;  %21 = sbr.rel (!%p19_p7) target bundleno = 6 (0x6), region = 94 }
 0x17d   :  { %626 = vsyncpa [#allocation3], 1 }
 0x17e   :  { %628 = vsyncpa [#allocation3 + $0x1], 1 }
 0x17f   :  { %629 = vsyncpa [#allocation6], 1 }
 0x180   :  { %630 = vsyncpa [#allocation4], 1 }
 0x181   :  { %632 = vsyncpa [#allocation4 + $0x1], 1 }

</bundles_post_ra>
